<compile_context>
chip_gen: v7x
topology: tpu7x:2x2x1
jax: 0.10.0
libtpu: 0.0.40
codegen_flags: <defaults>
</compile_context>

<pallas_src>
import jax
import jax.numpy as jnp
from jax.experimental import pallas as pl
from jax.experimental.pallas import tpu as pltpu


def _round_up(a: int, m: int) -> int:
    return ((a + m - 1) // m) * m


def final_layer_kernel(g_ref, x_ref, w_ref, b_ref, o_ref):
    """Computes one (TM, TN) output tile.

    g_ref: (1,)     SMEM  — RMSNorm gain (scalar parameter)
    x_ref: (TM, D)  VMEM  — activation row tile
    w_ref: (D, TN)  VMEM  — pre-transposed weight slab (resident or streamed)
    b_ref: (1, TN)  VMEM  — bias slab
    o_ref: (TM, TN) VMEM  — output tile
    """
    xf = x_ref[...].astype(jnp.float32)

    # RMSNorm: x / max(||x||_2, 1e-12) * sqrt(D) * g
    # rsqrt (EUP) of the squared norm clamped at eps^2 == 1/max(||x||, eps);
    # sqrt(D) * g is folded into the single per-row broadcast multiply.
    sq_norm = jnp.sum(xf * xf, axis=-1, keepdims=True)
    inv = jax.lax.rsqrt(jnp.maximum(sq_norm, 1e-24))
    scale = jnp.sqrt(jnp.float32(x_ref.shape[-1])) * g_ref[0]
    xs = (xf * (inv * scale)).astype(w_ref.dtype)  # MXU operand in weight dtype

    # Linear: (TM, D) @ (D, TN) with f32 accumulation on the MXU, then bias.
    out = jnp.dot(xs, w_ref[...], preferred_element_type=jnp.float32)
    out = out + b_ref[...].astype(jnp.float32)
    o_ref[...] = out.astype(o_ref.dtype)


def final_layer(x, y, w, b, g, *, tile_m=512, tile_n=512):
    """x: (B, S, D); y unused (parity); w: (out_dim, D); b: (out_dim,); g: scalar."""
    del y  # unused in the PyTorch forward as well
    B, S, D = x.shape
    out_dim = w.shape[0]
    M = B * S

    x_size = jnp.dtype(x.dtype).itemsize
    w_size = jnp.dtype(w.dtype).itemsize

    # ---- hardware-aware VMEM budget (v7x: 64 MiB/TC, v5e/v6e: 128 MiB) ------
    try:
        vmem_cap = int(pltpu.get_tpu_info().vmem_capacity_bytes)
    except Exception:
        vmem_cap = 64 << 20                     # conservative fallback (v7x size)
    budget = (vmem_cap * 17) // 20              # ~85% of physical VMEM

    # ---- output / weight tiling ---------------------------------------------
    out_pad = _round_up(out_dim, 128)           # lane-dense (unmasked) stores
    resident_w_bytes = D * out_pad * w_size     # single-buffered resident W
    stream_w = resident_w_bytes > (2 * budget) // 5
    if stream_w:
        tn = min(_round_up(tile_n, 128), out_pad)
        stream_w = tn < out_pad                 # one slab anyway -> keep resident
    if not stream_w:
        tn = out_pad

    # ---- row tile: largest multiple of 8 that fits the VMEM budget ----------
    def vmem_estimate(tm_):
        tiles = tm_ * (2 * D * x_size + 2 * tn * x_size)      # x / out, double-buffered
        temps = tm_ * (2 * D * 4 + D * w_size + tn * 4)       # in-kernel f32 temporaries
        wbytes = (2 * D * tn * w_size + 2 * tn * 4) if stream_w \
            else (D * tn * w_size + tn * 4)
        return tiles + temps + wbytes + (2 << 20)             # + compiler slack

    tm = _round_up(min(tile_m, _round_up(M, 8)), 8)
    while tm > 8 and vmem_estimate(tm) > budget:
        tm = _round_up(tm // 2, 8)

    grid = (pl.cdiv(M, tm), pl.cdiv(out_pad, tn))

    # ---- operands (no row padding: partial last row block is masked) --------
    x2 = x.reshape(M, D)
    wt = jnp.transpose(w)                       # (D, out_dim): one-time, amortized
    if out_pad != out_dim:
        wt = jnp.pad(wt, ((0, 0), (0, out_pad - out_dim)))
        b2 = jnp.pad(b, (0, out_pad - out_dim))
    else:
        b2 = b
    b2 = b2.reshape(1, out_pad)
    g1 = jnp.reshape(g, (1,)).astype(jnp.float32)

    def build(single_buffer_resident):
        wb_kwargs = {}
        if (not stream_w) and single_buffer_resident:
            # Constant block index across the whole grid -> one VMEM copy suffices.
            wb_kwargs = dict(pipeline_mode=pl.Buffered(1))
        return pl.pallas_call(
            final_layer_kernel,
            out_shape=jax.ShapeDtypeStruct((M, out_pad), x.dtype),
            grid_spec=pltpu.PrefetchScalarGridSpec(
                num_scalar_prefetch=0,
                grid=grid,
                in_specs=[
                    pl.BlockSpec(memory_space=pltpu.MemorySpace.SMEM),         # g
                    pl.BlockSpec((tm, D), lambda i, j: (i, 0)),                # x rows
                    pl.BlockSpec((D, tn), lambda i, j: (0, j), **wb_kwargs),   # W slab
                    pl.BlockSpec((1, tn), lambda i, j: (0, j), **wb_kwargs),   # bias
                ],
                out_specs=pl.BlockSpec((tm, tn), lambda i, j: (i, j)),
            ),
            compiler_params=pltpu.CompilerParams(
                dimension_semantics=("parallel", "arbitrary"),
                vmem_limit_bytes=int(budget)),
        )

    try:
        out2 = build(True)(g1, x2, wt, b2)
    except Exception:
        # Fallback for jax versions without Buffered(1) single-buffering support.
        out2 = build(False)(g1, x2, wt, b2)

    if out_pad != out_dim:
        out2 = out2[:, :out_dim]
    return out2.reshape(B, S, out_dim)


def final_layer_ref(x, w, b, g):
    """Pure-JAX f32 reference matching the PyTorch forward."""
    xf = x.astype(jnp.float32)
    l2 = jnp.sqrt(jnp.sum(xf * xf, axis=-1, keepdims=True))
    xn = xf / jnp.maximum(l2, 1e-12)
    xs = xn * jnp.sqrt(jnp.float32(x.shape[-1])) * jnp.reshape(g, ()).astype(jnp.float32)
    return xs @ w.astype(jnp.float32).T + b.astype(jnp.float32)


if __name__ == "__main__":
    key = jax.random.PRNGKey(0)
    kx, ky, kw, kb, kx2 = jax.random.split(key, 5)

    B, S, D, OUT = 2, 8, 32, 16

    x = jax.random.normal(kx, (B, S, D), dtype=jnp.float32)
    y = jax.random.normal(ky, (B, S, D), dtype=jnp.float32)   # unused parity arg

    # Parameters (shapes from nn.Linear(dim, out_dim) and RMSNorm.g)
    w = jax.random.normal(kw, (OUT, D), dtype=jnp.float32) / jnp.sqrt(jnp.float32(D))
    b = jax.random.normal(kb, (OUT,), dtype=jnp.float32) * 0.5
    g = jnp.full((1,), 1.5, dtype=jnp.float32)                # non-trivial gain

    out = final_layer(x, y, w, b, g)
    jax.block_until_ready(out)
    ref = final_layer_ref(x, w, b, g)
    assert out.shape == (B, S, OUT)
    # Tolerance covers the MXU's default-precision f32 matmul path.
    err = float(jnp.max(jnp.abs(out.astype(jnp.float32) - ref)))
    assert err < 5e-2, f"f32 mismatch vs reference: max abs err = {err}"

    # Ragged rows (B*S not a multiple of the tile -> masked partial block) with
    # bf16 activations/weights to exercise the mixed-precision MXU path.
    B2, S2 = 3, 5
    xb = jax.random.normal(kx2, (B2, S2, D), dtype=jnp.float32).astype(jnp.bfloat16)
    wb = w.astype(jnp.bfloat16)
    out_r = final_layer(xb, None, wb, b, g)
    jax.block_until_ready(out_r)
    ref_r = final_layer_ref(xb.astype(jnp.float32), wb.astype(jnp.float32), b, g)
    assert out_r.shape == (B2, S2, OUT)
    err_r = float(jnp.max(jnp.abs(out_r.astype(jnp.float32) - ref_r)))
    assert err_r < 1.5e-1, f"bf16/ragged mismatch vs reference: max abs err = {err_r}"

    print("KERNEL_OK")
</pallas_src>

<mosaic_0001>
module attributes {stable_mosaic.version = 11 : i64} {
  func.func @final_layer_kernel(%arg0: i32, %arg1: i32, %arg2: memref<1xf32, #tpu.memory_space<smem>>, %arg3: memref<16x32xf32, #tpu.memory_space<vmem>>, %arg4: memref<32x128xf32, #tpu.memory_space<vmem>>, %arg5: memref<1x128xf32, #tpu.memory_space<vmem>>, %arg6: memref<16x128xf32, #tpu.memory_space<vmem>>) attributes {dimension_semantics = [#tpu.dimension_semantics<parallel>, #tpu.dimension_semantics<arbitrary>], iteration_bounds = array<i64: 1, 1>, scalar_prefetch = 0 : i64, scratch_operands = 0 : i64, tpu.core_type = #tpu.core_type<tc>, window_params = [{transform_indices = @transform_0, window_bounds = array<i64: 1>}, {transform_indices = @transform_1, window_bounds = array<i64: 16, 32>}, {pipeline_mode = #tpu.pipeline_mode<synchronous>, transform_indices = @transform_2, window_bounds = array<i64: 32, 128>}, {pipeline_mode = #tpu.pipeline_mode<synchronous>, transform_indices = @transform_3, window_bounds = array<i64: 1, 128>}, {transform_indices = @transform_4, window_bounds = array<i64: 16, 128>}]} {
    %c0 = arith.constant 0 : index
    %c0_0 = arith.constant 0 : index
    %0 = vector.load %arg3[%c0, %c0_0] : memref<16x32xf32, #tpu.memory_space<vmem>>, vector<16x32xf32>
    %1 = arith.mulf %0, %0 : vector<16x32xf32>
    %cst = arith.constant dense<0.000000e+00> : vector<16xf32>
    %2 = vector.multi_reduction <add>, %1, %cst [1] : vector<16x32xf32> to vector<16xf32>
    %3 = vector.shape_cast %2 : vector<16xf32> to vector<16x1xf32>
    %cst_1 = arith.constant 1.000000e-24 : f32
    %4 = vector.broadcast %cst_1 : f32 to vector<16x1xf32>
    %5 = arith.maximumf %3, %4 : vector<16x1xf32>
    %6 = math.rsqrt %5 : vector<16x1xf32>
    %cst_2 = arith.constant 3.200000e+01 : f32
    %7 = math.sqrt %cst_2 : f32
    %c0_3 = arith.constant 0 : index
    %8 = memref.load %arg2[%c0_3] : memref<1xf32, #tpu.memory_space<smem>>
    %9 = arith.mulf %7, %8 : f32
    %10 = vector.broadcast %9 : f32 to vector<16x1xf32>
    %11 = arith.mulf %6, %10 : vector<16x1xf32>
    %12 = vector.broadcast %11 : vector<16x1xf32> to vector<16x32xf32>
    %13 = arith.mulf %0, %12 : vector<16x32xf32>
    %c0_4 = arith.constant 0 : index
    %c0_5 = arith.constant 0 : index
    %14 = vector.load %arg4[%c0_4, %c0_5] : memref<32x128xf32, #tpu.memory_space<vmem>>, vector<32x128xf32>
    %cst_6 = arith.constant dense<0.000000e+00> : vector<16x128xf32>
    %15 = tpu.matmul %13, %14, %cst_6 {dimension_numbers = #tpu.dot_dimension_numbers<[1], [0], [0], [1], [0, 0, 1, 1], [], []>} : vector<16x32xf32>, vector<32x128xf32>, vector<16x128xf32> -> vector<16x128xf32>
    %c0_7 = arith.constant 0 : index
    %c0_8 = arith.constant 0 : index
    %16 = vector.load %arg5[%c0_7, %c0_8] : memref<1x128xf32, #tpu.memory_space<vmem>>, vector<1x128xf32>
    %17 = vector.broadcast %16 : vector<1x128xf32> to vector<16x128xf32>
    %18 = arith.addf %15, %17 : vector<16x128xf32>
    %c0_9 = arith.constant 0 : index
    %c0_10 = arith.constant 0 : index
    %19 = vector.load %arg6[%c0_9, %c0_10] : memref<16x128xf32, #tpu.memory_space<vmem>>, vector<16x128xf32>
    tpu.vector_store %arg6[%c0_9, %c0_10], %18 {strides = array<i32>} : memref<16x128xf32, #tpu.memory_space<vmem>>, vector<16x128xf32>,
    return
  }
  func.func @transform_0(%arg0: i32, %arg1: i32) -> i32 {
    %c0_i32 = arith.constant 0 : i32
    %c0_i32_0 = arith.constant 0 : i32
    return %c0_i32 : i32
  }
  func.func @transform_1(%arg0: i32, %arg1: i32) -> (i32, i32) {
    %c0_i32 = arith.constant 0 : i32
    %c0_i32_0 = arith.constant 0 : i32
    return %arg0, %c0_i32 : i32, i32
  }
  func.func @transform_2(%arg0: i32, %arg1: i32) -> (i32, i32) {
    %c0_i32 = arith.constant 0 : i32
    %c0_i32_0 = arith.constant 0 : i32
    return %c0_i32, %arg1 : i32, i32
  }
  func.func @transform_3(%arg0: i32, %arg1: i32) -> (i32, i32) {
    %c0_i32 = arith.constant 0 : i32
    %c0_i32_0 = arith.constant 0 : i32
    return %c0_i32, %arg1 : i32, i32
  }
  func.func @transform_4(%arg0: i32, %arg1: i32) -> (i32, i32) {
    %c0_i32 = arith.constant 0 : i32
    return %arg0, %arg1 : i32, i32
  }
}

module attributes {stable_mosaic.version = 11 : i64} {
  func.func @final_layer_kernel(%arg0: i32, %arg1: i32, %arg2: memref<1xf32, #tpu.memory_space<smem>>, %arg3: memref<16x32xf32, #tpu.memory_space<vmem>>, %arg4: memref<32x128xf32, #tpu.memory_space<vmem>>, %arg5: memref<1x128xf32, #tpu.memory_space<vmem>>, %arg6: memref<16x128xf32, #tpu.memory_space<vmem>>) attributes {dimension_semantics = [#tpu.dimension_semantics<parallel>, #tpu.dimension_semantics<arbitrary>], iteration_bounds = array<i64: 1, 1>, scalar_prefetch = 0 : i64, scratch_operands = 0 : i64, tpu.core_type = #tpu.core_type<tc>, window_params = [{transform_indices = @transform_0, window_bounds = array<i64: 1>}, {transform_indices = @transform_1, window_bounds = array<i64: 16, 32>}, {transform_indices = @transform_2, window_bounds = array<i64: 32, 128>}, {transform_indices = @transform_3, window_bounds = array<i64: 1, 128>}, {transform_indices = @transform_4, window_bounds = array<i64: 16, 128>}]} {
    %c0 = arith.constant 0 : index
    %c0_0 = arith.constant 0 : index
    %0 = vector.load %arg3[%c0, %c0_0] : memref<16x32xf32, #tpu.memory_space<vmem>>, vector<16x32xf32>
    %1 = arith.mulf %0, %0 : vector<16x32xf32>
    %cst = arith.constant dense<0.000000e+00> : vector<16xf32>
    %2 = vector.multi_reduction <add>, %1, %cst [1] : vector<16x32xf32> to vector<16xf32>
    %3 = vector.shape_cast %2 : vector<16xf32> to vector<16x1xf32>
    %cst_1 = arith.constant 1.000000e-24 : f32
    %4 = vector.broadcast %cst_1 : f32 to vector<16x1xf32>
    %5 = arith.maximumf %3, %4 : vector<16x1xf32>
    %6 = math.rsqrt %5 : vector<16x1xf32>
    %cst_2 = arith.constant 3.200000e+01 : f32
    %7 = math.sqrt %cst_2 : f32
    %c0_3 = arith.constant 0 : index
    %8 = memref.load %arg2[%c0_3] : memref<1xf32, #tpu.memory_space<smem>>
    %9 = arith.mulf %7, %8 : f32
    %10 = vector.broadcast %9 : f32 to vector<16x1xf32>
    %11 = arith.mulf %6, %10 : vector<16x1xf32>
    %12 = vector.broadcast %11 : vector<16x1xf32> to vector<16x32xf32>
    %13 = arith.mulf %0, %12 : vector<16x32xf32>
    %c0_4 = arith.constant 0 : index
    %c0_5 = arith.constant 0 : index
    %14 = vector.load %arg4[%c0_4, %c0_5] : memref<32x128xf32, #tpu.memory_space<vmem>>, vector<32x128xf32>
    %cst_6 = arith.constant dense<0.000000e+00> : vector<16x128xf32>
    %15 = tpu.matmul %13, %14, %cst_6 {dimension_numbers = #tpu.dot_dimension_numbers<[1], [0], [0], [1], [0, 0, 1, 1], [], []>} : vector<16x32xf32>, vector<32x128xf32>, vector<16x128xf32> -> vector<16x128xf32>
    %c0_7 = arith.constant 0 : index
    %c0_8 = arith.constant 0 : index
    %16 = vector.load %arg5[%c0_7, %c0_8] : memref<1x128xf32, #tpu.memory_space<vmem>>, vector<1x128xf32>
    %17 = vector.broadcast %16 : vector<1x128xf32> to vector<16x128xf32>
    %18 = arith.addf %15, %17 : vector<16x128xf32>
    %c0_9 = arith.constant 0 : index
    %c0_10 = arith.constant 0 : index
    %19 = vector.load %arg6[%c0_9, %c0_10] : memref<16x128xf32, #tpu.memory_space<vmem>>, vector<16x128xf32>
    tpu.vector_store %arg6[%c0_9, %c0_10], %18 {strides = array<i32>} : memref<16x128xf32, #tpu.memory_space<vmem>>, vector<16x128xf32>,
    return
  }
  func.func @transform_0(%arg0: i32, %arg1: i32) -> i32 {
    %c0_i32 = arith.constant 0 : i32
    %c0_i32_0 = arith.constant 0 : i32
    return %c0_i32 : i32
  }
  func.func @transform_1(%arg0: i32, %arg1: i32) -> (i32, i32) {
    %c0_i32 = arith.constant 0 : i32
    %c0_i32_0 = arith.constant 0 : i32
    return %arg0, %c0_i32 : i32, i32
  }
  func.func @transform_2(%arg0: i32, %arg1: i32) -> (i32, i32) {
    %c0_i32 = arith.constant 0 : i32
    %c0_i32_0 = arith.constant 0 : i32
    return %c0_i32, %arg1 : i32, i32
  }
  func.func @transform_3(%arg0: i32, %arg1: i32) -> (i32, i32) {
    %c0_i32 = arith.constant 0 : i32
    %c0_i32_0 = arith.constant 0 : i32
    return %c0_i32, %arg1 : i32, i32
  }
  func.func @transform_4(%arg0: i32, %arg1: i32) -> (i32, i32) {
    %c0_i32 = arith.constant 0 : i32
    return %arg0, %arg1 : i32, i32
  }
}

</mosaic_0001>

<bundles_post_ra>
// kernel: tpu_custom_call.1
= control target key start
LH: loop header
LB: loop body
LE: loop exit
PB: predicated region body
PF: predicated region fallthrough
CT: control target
= control target key end

     0   :  { %10 = vsyncpa [#allocation4], 0  ;;  %s375_s0 = inlined_call_operand.<no memory space> [shape: f32[1], index: 0, kind: input, shape index: {}]   ;;  %s376_s1 = inlined_call_operand.hbm [shape: f32[16,32], index: 1, kind: input, shape index: {}]   ;;  %s377_s2 = inlined_call_operand.hbm [shape: f32[32,128], index: 2, kind: input, shape index: {}]   ;;  %s378_s3 = inlined_call_operand.vmem [shape: f32[1,128], index: 3, kind: input, shape index: {}]   ;;  %s379_s4 = inlined_call_operand.hbm [shape: f32[16,128], index: 4, kind: output, shape index: {}]  }
   0x1   :  { %11 = vsyncpa [#allocation7], 0 }
   0x2   :  { %12 = vsyncpa [#allocation5], 0  ;;  %s290_s15 = smov [#allocation3]   ;;  %s218_s19 = scalar_lea.hbm %s376_s1, 256 }
   0x3   :  { %s20_s16 = sshll.u32 %s290_s15, 4  ;;  %p219_p0 = scmp.ne.s32.totalorder %s376_s1, %s218_s19  ;;  %s21_s16 = int_to_ptr.vmem [resolvable:$true] %s20_s16 }
   0x4   :  { %p222_p1 = scmp.lt.u32.totalorder %s218_s19, %s376_s1 }
   0x6   :  { %p224_p2 = pnand %p222_p1, %p219_p0 }
   0x8   :  { %227 = shalt.err (!%p224_p2)
}
   0x9   :  { %s228_s24 = scalar_lea.vmem %s21_s16, 256  ;;  %p233_p4 = scmp.lt.s32.totalorder %s21_s16, %s21_s16 }
   0xa   :  { %p229_p3 = scmp.ne.s32.totalorder %s21_s16, %s228_s24  ;;  %p234_p5 = scmp.lt.s32.totalorder %s228_s24, %s228_s24 }
   0xc   :  { %p235_p6 = por %p234_p5, %p233_p4 }
   0xe   :  { %p236_p7 = pnand %p235_p6, %p229_p3 }
  0x10   :  { %239 = shalt.err (!%p236_p7)
}
  0x11   :  { %s291_s25 = smov 128   ;;  %s292_s26 = smov 8  }
  0x12   :  { %26 = dma.hbm_to_vmem [thread:$0]  %s376_s1, 256, %s21_s16, [#allocation4], %s291_s25, %s291_s25, %s292_s26  }
  0x13   :  { %s293_s29 = smov [#allocation6]   ;;  %s240_s7 = scalar_lea.hbm %s377_s2, 512 }
  0x14   :  { %s32_s30 = sshll.u32 %s293_s29, 4  ;;  %p241_p8 = scmp.ne.s32.totalorder %s377_s2, %s240_s7  ;;  %s33_s30 = int_to_ptr.vmem [resolvable:$true] %s32_s30 }
  0x15   :  { %p244_p9 = scmp.lt.u32.totalorder %s240_s7, %s377_s2 }
  0x17   :  { %p246_p10 = pnand %p244_p9, %p241_p8 }
  0x19   :  { %249 = shalt.err (!%p246_p10)
}
  0x1a   :  { %s250_s12 = scalar_lea.vmem %s33_s30, 512  ;;  %p255_p12 = scmp.lt.s32.totalorder %s33_s30, %s33_s30 }
  0x1b   :  { %p251_p11 = scmp.ne.s32.totalorder %s33_s30, %s250_s12  ;;  %p256_p13 = scmp.lt.s32.totalorder %s250_s12, %s250_s12 }
  0x1d   :  { %p257_p0 = por %p256_p13, %p255_p12 }
  0x1f   :  { %p258_p1 = pnand %p257_p0, %p251_p11 }
  0x21   :  { %261 = shalt.err (!%p258_p1)
}
  0x22   :  { %38 = dma.hbm_to_vmem [thread:$0]  %s377_s2, 512, %s33_s30, [#allocation7], %s291_s25, %s291_s25, %s292_s26  }
  0x23   :  { %284 = dma.done.wait [#allocation4], 256  }
  0x24   :  { %285 = vsyncadd [#allocation4], 4294967040 }
  0x25   :  { %286 = dma.done.wait [#allocation7], 512  }
  0x26   :  { %287 = vsyncadd [#allocation7], 4294966784  ;;  %v47_v0 = vld [vmem:[#allocation3] sm:$0xff]  ;;  %vm51_vm0 = vcmask 261120   ;;  %v48_v1 = vld [vmem:[#allocation3 + $0x8] sm:$0xff]  ;;  %s294_s18 = smov [#allocation8]  }
  0x27   :  { %v49_v2 = vmul.f32 %v47_v0, %v47_v0  ;;  %v50_v3 = vmul.f32 %v48_v1, %v48_v1  ;;  %v69_v6 = vld [vmem:[#allocation6] sm:$0xff]  ;;  %v70_v7 = vld [vmem:[#allocation6 + $0x8] sm:$0xff]  ;;  %v71_v8 = vld [vmem:[#allocation6 + $0x10] sm:$0xff]  ;;  %s63_s15 = smul.f32 5.656854, %s375_s0  ;;  %s168_s19 = sshll.u32 %s294_s18, 4  ;;  %s169_s19 = int_to_ptr.vmem [resolvable:$true] %s168_s19 }
  0x28   :  { %v201_v9 = vpack.c.bf16 %v70_v7, %v69_v6  ;;  %v72_v10 = vld [vmem:[#allocation6 + $0x18] sm:$0xff]  ;;  %v181_v23 = vld [vmem:[%s378_s3] ss:$0 sm:$0xff]  ;;  %s262_s0 = scalar_lea.vmem %s169_s19, 256  ;;  %p267_p3 = scmp.lt.s32.totalorder %s169_s19, %s169_s19 }
  0x29   :  { %v52_v4 = vsel %vm51_vm0, %v49_v2, 0.0  ;;  %v55_v5 = vsel %vm51_vm0, %v50_v3, 0.0  ;;  %v205_v11 = vpack.c.bf16 %v72_v10, %v71_v8  ;;  %v64_v16 = vstv %s63_s15  ;;  %p263_p2 = scmp.ne.s32.totalorder %s169_s19, %s262_s0  ;;  %p268_p4 = scmp.lt.s32.totalorder %s262_s0, %s262_s0 }
  0x2a   :  { %53 = vadd.xlane.f32.xlu0 %v52_v4  ;;  %202 = vmatprep.subr.bf16.mxu0 %v201_v9 }
  0x2b   :  { %204 = vmatpush3.bf16.msra.mxu0 %v201_v9  ;;  %p269_p5 = por %p268_p4, %p267_p3 }
  0x2c   :  { %206 = vmatprep.subr.bf16.mxu0 %v205_v11 }
  0x2d   :  { %p270_p6 = pnand %p269_p5, %p263_p2 }
  0x2e   :  { %56 = vadd.xlane.f32.xlu0 %v55_v5 }
  0x2f   :  { %208 = vmatpush3.bf16.msra.mxu0 %v205_v11 }
  0xb7   :  { %v54_v12 = vpop.xlane.xlu0 %53 }
  0xb8   :  { %v58_v13 = vmax.f32 %v54_v12, 1e-24 }
  0xba   :  { %214 = vrsqrt.f32 %v58_v13 }
  0xbb   :  { %v57_v14 = vpop.xlane.xlu0 %56 }
  0xbc   :  { %v59_v15 = vmax.f32 %v57_v14, 1e-24 }
  0xbe   :  { %216 = vrsqrt.f32 %v59_v15 }
  0xc4   :  { %v215_v17 = vpop.eup %214 }
  0xc5   :  { %v65_v18 = vmul.f32 %v215_v17, %v64_v16 }
  0xc7   :  { %v67_v19 = vmul.f32 %v65_v18, %v47_v0 }
  0xc8   :  { %v217_v20 = vpop.eup %216 }
  0xc9   :  { %v66_v21 = vmul.f32 %v217_v20, %v64_v16  ;;  %198 = vmatprep.mubr.msk.f32.mxu0 %vm51_vm0, %v67_v19 }
  0xcb   :  { %v68_v22 = vmul.f32 %v66_v21, %v48_v1 }
  0xcd   :  { %199 = vmatmul.mubr.msk.f32.vlgmr.msra.gmra.mrb[0].mxu0 %vm51_vm0, %v68_v22 }
 0x1a0   :  { %v200_v24 = vpop.f32.mrb[0].mxu0 }
 0x1a1   :  { %v158_v25 = vadd.f32 %v200_v24, %v181_v23  ;;  %v152_v26 = vpop.f32.mrb[1].mxu0 }
 0x1a2   :  { %v153_v27 = vadd.f32 %v181_v23, %v152_v26 }
 0x1a3   :  { %162 = vst [vmem:[#allocation8 + $0x8] sm:$0xff] %v158_v25 }
 0x1a4   :  { %161 = vst [vmem:[#allocation8] sm:$0xff] %v153_v27 }
 0x1a5   :  { %273 = shalt.err (!%p270_p6)
}
 0x1a6   :  { %s274_s3 = scalar_lea.hbm %s379_s4, 256 }
 0x1a7   :  { %p275_p7 = scmp.ne.s32.totalorder %s379_s4, %s274_s3  ;;  %p278_p8 = scmp.lt.u32.totalorder %s274_s3, %s379_s4 }
 0x1a9   :  { %p280_p9 = pnand %p278_p8, %p275_p7 }
 0x1ab   :  { %283 = shalt.err (!%p280_p9)
}
 0x1ac   :  { %174 = dma.vmem_to_hbm [thread:$0]  %s169_s19, 256, %s379_s4, [#allocation5], %s291_s25, %s291_s25, %s292_s26  }
 0x1ad   :  { %288 = dma.done.wait [#allocation5], 256  }
 0x1ae   :  { %289 = vsyncadd [#allocation5], 4294967040 }
 0x1af   :  { %178 = vsyncpa [#allocation4], 1 }
 0x1b0   :  { %179 = vsyncpa [#allocation7], 1 }
 0x1b1   :  { %180 = vsyncpa [#allocation5], 1 }

// kernel: tpu_custom_call.1
= control target key start
LH: loop header
LB: loop body
LE: loop exit
PB: predicated region body
PF: predicated region fallthrough
CT: control target
= control target key end

     0   :  { %10 = vsyncpa [#allocation4], 0  ;;  %s375_s0 = inlined_call_operand.<no memory space> [shape: f32[1], index: 0, kind: input, shape index: {}]   ;;  %s376_s1 = inlined_call_operand.hbm [shape: f32[16,32], index: 1, kind: input, shape index: {}]   ;;  %s377_s2 = inlined_call_operand.hbm [shape: f32[32,128], index: 2, kind: input, shape index: {}]   ;;  %s378_s3 = inlined_call_operand.vmem [shape: f32[1,128], index: 3, kind: input, shape index: {}]   ;;  %s379_s4 = inlined_call_operand.hbm [shape: f32[16,128], index: 4, kind: output, shape index: {}]  }
   0x1   :  { %11 = vsyncpa [#allocation7], 0 }
   0x2   :  { %12 = vsyncpa [#allocation5], 0  ;;  %s290_s15 = smov [#allocation3]   ;;  %s218_s19 = scalar_lea.hbm %s376_s1, 256 }
   0x3   :  { %s20_s16 = sshll.u32 %s290_s15, 4  ;;  %p219_p0 = scmp.ne.s32.totalorder %s376_s1, %s218_s19  ;;  %s21_s16 = int_to_ptr.vmem [resolvable:$true] %s20_s16 }
   0x4   :  { %p222_p1 = scmp.lt.u32.totalorder %s218_s19, %s376_s1 }
   0x6   :  { %p224_p2 = pnand %p222_p1, %p219_p0 }
   0x8   :  { %227 = shalt.err (!%p224_p2)
}
   0x9   :  { %s228_s24 = scalar_lea.vmem %s21_s16, 256  ;;  %p233_p4 = scmp.lt.s32.totalorder %s21_s16, %s21_s16 }
   0xa   :  { %p229_p3 = scmp.ne.s32.totalorder %s21_s16, %s228_s24  ;;  %p234_p5 = scmp.lt.s32.totalorder %s228_s24, %s228_s24 }
   0xc   :  { %p235_p6 = por %p234_p5, %p233_p4 }
   0xe   :  { %p236_p7 = pnand %p235_p6, %p229_p3 }
  0x10   :  { %239 = shalt.err (!%p236_p7)
}
  0x11   :  { %s291_s25 = smov 128   ;;  %s292_s26 = smov 8  }
  0x12   :  { %26 = dma.hbm_to_vmem [thread:$0]  %s376_s1, 256, %s21_s16, [#allocation4], %s291_s25, %s291_s25, %s292_s26  }
  0x13   :  { %s293_s29 = smov [#allocation6]   ;;  %s240_s7 = scalar_lea.hbm %s377_s2, 512 }
  0x14   :  { %s32_s30 = sshll.u32 %s293_s29, 4  ;;  %p241_p8 = scmp.ne.s32.totalorder %s377_s2, %s240_s7  ;;  %s33_s30 = int_to_ptr.vmem [resolvable:$true] %s32_s30 }
  0x15   :  { %p244_p9 = scmp.lt.u32.totalorder %s240_s7, %s377_s2 }
  0x17   :  { %p246_p10 = pnand %p244_p9, %p241_p8 }
  0x19   :  { %249 = shalt.err (!%p246_p10)
}
  0x1a   :  { %s250_s12 = scalar_lea.vmem %s33_s30, 512  ;;  %p255_p12 = scmp.lt.s32.totalorder %s33_s30, %s33_s30 }
  0x1b   :  { %p251_p11 = scmp.ne.s32.totalorder %s33_s30, %s250_s12  ;;  %p256_p13 = scmp.lt.s32.totalorder %s250_s12, %s250_s12 }
  0x1d   :  { %p257_p0 = por %p256_p13, %p255_p12 }
  0x1f   :  { %p258_p1 = pnand %p257_p0, %p251_p11 }
  0x21   :  { %261 = shalt.err (!%p258_p1)
}
  0x22   :  { %38 = dma.hbm_to_vmem [thread:$0]  %s377_s2, 512, %s33_s30, [#allocation7], %s291_s25, %s291_s25, %s292_s26  }
  0x23   :  { %284 = dma.done.wait [#allocation4], 256  }
  0x24   :  { %285 = vsyncadd [#allocation4], 4294967040 }
  0x25   :  { %286 = dma.done.wait [#allocation7], 512  }
  0x26   :  { %287 = vsyncadd [#allocation7], 4294966784  ;;  %v47_v0 = vld [vmem:[#allocation3] sm:$0xff]  ;;  %vm51_vm0 = vcmask 261120   ;;  %v48_v1 = vld [vmem:[#allocation3 + $0x8] sm:$0xff]  ;;  %s294_s18 = smov [#allocation8]  }
  0x27   :  { %v49_v2 = vmul.f32 %v47_v0, %v47_v0  ;;  %v50_v3 = vmul.f32 %v48_v1, %v48_v1  ;;  %v69_v6 = vld [vmem:[#allocation6] sm:$0xff]  ;;  %v70_v7 = vld [vmem:[#allocation6 + $0x8] sm:$0xff]  ;;  %v71_v8 = vld [vmem:[#allocation6 + $0x10] sm:$0xff]  ;;  %s63_s15 = smul.f32 5.656854, %s375_s0  ;;  %s168_s19 = sshll.u32 %s294_s18, 4  ;;  %s169_s19 = int_to_ptr.vmem [resolvable:$true] %s168_s19 }
  0x28   :  { %v201_v9 = vpack.c.bf16 %v70_v7, %v69_v6  ;;  %v72_v10 = vld [vmem:[#allocation6 + $0x18] sm:$0xff]  ;;  %v181_v23 = vld [vmem:[%s378_s3] ss:$0 sm:$0xff]  ;;  %s262_s0 = scalar_lea.vmem %s169_s19, 256  ;;  %p267_p3 = scmp.lt.s32.totalorder %s169_s19, %s169_s19 }
  0x29   :  { %v52_v4 = vsel %vm51_vm0, %v49_v2, 0.0  ;;  %v55_v5 = vsel %vm51_vm0, %v50_v3, 0.0  ;;  %v205_v11 = vpack.c.bf16 %v72_v10, %v71_v8  ;;  %v64_v16 = vstv %s63_s15  ;;  %p263_p2 = scmp.ne.s32.totalorder %s169_s19, %s262_s0  ;;  %p268_p4 = scmp.lt.s32.totalorder %s262_s0, %s262_s0 }
  0x2a   :  { %53 = vadd.xlane.f32.xlu0 %v52_v4  ;;  %202 = vmatprep.subr.bf16.mxu0 %v201_v9 }
  0x2b   :  { %204 = vmatpush3.bf16.msra.mxu0 %v201_v9  ;;  %p269_p5 = por %p268_p4, %p267_p3 }
  0x2c   :  { %206 = vmatprep.subr.bf16.mxu0 %v205_v11 }
  0x2d   :  { %p270_p6 = pnand %p269_p5, %p263_p2 }
  0x2e   :  { %56 = vadd.xlane.f32.xlu0 %v55_v5 }
  0x2f   :  { %208 = vmatpush3.bf16.msra.mxu0 %v205_v11 }
  0xb7   :  { %v54_v12 = vpop.xlane.xlu0 %53 }
  0xb8   :  { %v58_v13 = vmax.f32 %v54_v12, 1e-24 }
  0xba   :  { %214 = vrsqrt.f32 %v58_v13 }
  0xbb   :  { %v57_v14 = vpop.xlane.xlu0 %56 }
  0xbc   :  { %v59_v15 = vmax.f32 %v57_v14, 1e-24 }
  0xbe   :  { %216 = vrsqrt.f32 %v59_v15 }
  0xc4   :  { %v215_v17 = vpop.eup %214 }
  0xc5   :  { %v65_v18 = vmul.f32 %v215_v17, %v64_v16 }
  0xc7   :  { %v67_v19 = vmul.f32 %v65_v18, %v47_v0 }
  0xc8   :  { %v217_v20 = vpop.eup %216 }
  0xc9   :  { %v66_v21 = vmul.f32 %v217_v20, %v64_v16  ;;  %198 = vmatprep.mubr.msk.f32.mxu0 %vm51_vm0, %v67_v19 }
  0xcb   :  { %v68_v22 = vmul.f32 %v66_v21, %v48_v1 }
  0xcd   :  { %199 = vmatmul.mubr.msk.f32.vlgmr.msra.gmra.mrb[0].mxu0 %vm51_vm0, %v68_v22 }
 0x1a0   :  { %v200_v24 = vpop.f32.mrb[0].mxu0 }
 0x1a1   :  { %v158_v25 = vadd.f32 %v200_v24, %v181_v23  ;;  %v152_v26 = vpop.f32.mrb[1].mxu0 }
 0x1a2   :  { %v153_v27 = vadd.f32 %v181_v23, %v152_v26 }
 0x1a3   :  { %162 = vst [vmem:[#allocation8 + $0x8] sm:$0xff] %v158_v25 }
 0x1a4   :  { %161 = vst [vmem:[#allocation8] sm:$0xff] %v153_v27 }
 0x1a5   :  { %273 = shalt.err (!%p270_p6)
}
 0x1a6   :  { %s274_s3 = scalar_lea.hbm %s379_s4, 256 }
 0x1a7   :  { %p275_p7 = scmp.ne.s32.totalorder %s379_s4, %s274_s3  ;;  %p278_p8 = scmp.lt.u32.totalorder %s274_s3, %s379_s4 }
 0x1a9   :  { %p280_p9 = pnand %p278_p8, %p275_p7 }
 0x1ab   :  { %283 = shalt.err (!%p280_p9)
}
 0x1ac   :  { %174 = dma.vmem_to_hbm [thread:$0]  %s169_s19, 256, %s379_s4, [#allocation5], %s291_s25, %s291_s25, %s292_s26  }
 0x1ad   :  { %288 = dma.done.wait [#allocation5], 256  }
 0x1ae   :  { %289 = vsyncadd [#allocation5], 4294967040 }
 0x1af   :  { %178 = vsyncpa [#allocation4], 1 }
 0x1b0   :  { %179 = vsyncpa [#allocation7], 1 }
 0x1b1   :  { %180 = vsyncpa [#allocation5], 1 }

</bundles_post_ra>
